<compile_context>
chip_gen: v5e
topology: v5e:2x2
jax: 0.10.0
libtpu: 0.0.40
codegen_flags: <defaults>
</compile_context>

<pallas_src>
import jax
import jax.numpy as jnp
from jax import lax
from jax.experimental import pallas as pl
from jax.experimental.pallas import tpu as pltpu


# ----------------------------------------------------------------------------
# Fused double_conv kernel (operates on one already-pooled batch element)
# ----------------------------------------------------------------------------
def down_double_conv_kernel(x_ref, w1_ref, s1_ref, b1_ref, w2_ref, s2_ref,
                            b2_ref, o_ref, pad1_ref, pad2_ref):
    """x_ref: (1, h, w, Cin) pooled NHWC block; w*: (9*C, Cout) tap-flattened
    3x3 weights; s*/b*: (1, Cout) folded BN scale/bias; o_ref: (1, h, w, Cout);
    pad*: VMEM scratch (h+2, w+2, C) holding the zero-haloed activations."""
    h, w = x_ref.shape[1], x_ref.shape[2]
    cin = x_ref.shape[3]
    cmid = pad2_ref.shape[2]
    cout = o_ref.shape[3]

    def conv3x3_bn_relu(pad_ref, src, w_ref, s_ref, b_ref, c):
        # Zero halo + interior write, entirely in VMEM (no HBM pad round trip).
        pad_ref[...] = jnp.zeros_like(pad_ref)
        pad_ref[1:h + 1, 1:w + 1, :] = src
        # im2col: 9 shifted views concatenated along the lane (channel) axis
        # -> one MXU matmul with K = 9*C instead of 9 tiny K=C pushes.
        taps = [pad_ref[ky:ky + h, kx:kx + w, :]
                for ky in range(3) for kx in range(3)]
        patch = jnp.concatenate(taps, axis=-1).reshape(h * w, 9 * c)
        y = jnp.dot(patch, w_ref[...], preferred_element_type=jnp.float32)
        # Folded eval-mode BatchNorm (per-channel scale/bias) + ReLU.
        return jnp.maximum(y * s_ref[...] + b_ref[...], 0.0)

    y1 = conv3x3_bn_relu(pad1_ref, x_ref[0], w1_ref, s1_ref, b1_ref, cin)
    y2 = conv3x3_bn_relu(pad2_ref, y1.reshape(h, w, cmid),
                         w2_ref, s2_ref, b2_ref, cmid)
    o_ref[0] = y2.reshape(h, w, cout).astype(o_ref.dtype)


def down_apply(pooled_nhwc, params):
    """pooled_nhwc: [B, h, w, Cin] -> [B, h, w, Cout] via fused double_conv."""
    B, h, w, cin = pooled_nhwc.shape
    cmid = params['w1'].shape[-1]
    cout = params['w2'].shape[-1]
    w1 = params['w1'].reshape(9 * cin, cmid)    # (ky, kx, cin) flattened to K
    w2 = params['w2'].reshape(9 * cmid, cout)
    return pl.pallas_call(
        down_double_conv_kernel,
        out_shape=jax.ShapeDtypeStruct((B, h, w, cout), jnp.float32),
        grid=(B,),
        in_specs=[
            pl.BlockSpec((1, h, w, cin), lambda b: (b, 0, 0, 0)),
            pl.BlockSpec((9 * cin, cmid), lambda b: (0, 0)),
            pl.BlockSpec((1, cmid), lambda b: (0, 0)),
            pl.BlockSpec((1, cmid), lambda b: (0, 0)),
            pl.BlockSpec((9 * cmid, cout), lambda b: (0, 0)),
            pl.BlockSpec((1, cout), lambda b: (0, 0)),
            pl.BlockSpec((1, cout), lambda b: (0, 0)),
        ],
        out_specs=pl.BlockSpec((1, h, w, cout), lambda b: (b, 0, 0, 0)),
        scratch_shapes=[
            pltpu.VMEM((h + 2, w + 2, cin), jnp.float32),
            pltpu.VMEM((h + 2, w + 2, cmid), jnp.float32),
        ],
        compiler_params=pltpu.CompilerParams(
            dimension_semantics=("parallel",)),
    )(pooled_nhwc, w1, params['s1'], params['b1'],
      w2, params['s2'], params['b2'])


@jax.jit
def down_forward(x_nchw, params):
    """PyTorch `down`: [B, Cin, H, W] -> [B, Cout, H//2, W//2]."""
    B, cin, H, W = x_nchw.shape
    x = jnp.transpose(x_nchw, (0, 2, 3, 1))                          # NHWC
    pooled = jnp.max(x.reshape(B, H // 2, 2, W // 2, 2, cin), axis=(2, 4))
    out = down_apply(pooled, params)                                 # NHWC
    return jnp.transpose(out, (0, 3, 1, 2))                          # NCHW


# ----------------------------------------------------------------------------
# Deterministic synthetic parameters (BatchNorm folded in eval mode)
# ----------------------------------------------------------------------------
def make_conv_bn_params(key, cin, cout):
    k1, k2, k3, k4, k5, k6 = jax.random.split(key, 6)
    w = jax.random.normal(k1, (3, 3, cin, cout), jnp.float32) / ((9.0 * cin) ** 0.5)
    b = 0.1 * jax.random.normal(k2, (cout,), jnp.float32)
    gamma = 1.0 + 0.1 * jax.random.normal(k3, (cout,), jnp.float32)
    beta = 0.1 * jax.random.normal(k4, (cout,), jnp.float32)
    mean = 0.1 * jax.random.normal(k5, (cout,), jnp.float32)
    var = jnp.abs(jax.random.normal(k6, (cout,), jnp.float32)) + 0.5
    eps = 1e-5
    scale = gamma / jnp.sqrt(var + eps)
    bias = beta + scale * (b - mean)
    return w, scale.reshape(1, cout), bias.reshape(1, cout)


def make_down_params(key, in_ch, out_ch):
    k1, k2 = jax.random.split(key)
    w1, s1, b1 = make_conv_bn_params(k1, in_ch, out_ch)
    w2, s2, b2 = make_conv_bn_params(k2, out_ch, out_ch)
    return dict(w1=w1, s1=s1, b1=b1, w2=w2, s2=s2, b2=b2)


# ----------------------------------------------------------------------------
# Pure-JAX reference (for a correctness sanity check)
# ----------------------------------------------------------------------------
def down_reference(x_nchw, params):
    B, cin, H, W = x_nchw.shape
    x = jnp.transpose(x_nchw, (0, 2, 3, 1))
    p = jnp.max(x.reshape(B, H // 2, 2, W // 2, 2, cin), axis=(2, 4))

    def conv(z, w, s, b):
        y = lax.conv_general_dilated(
            z, w, (1, 1), 'SAME',
            dimension_numbers=('NHWC', 'HWIO', 'NHWC'),
            precision=lax.Precision.HIGHEST)
        return jnp.maximum(y * s[0] + b[0], 0.0)

    y = conv(p, params['w1'], params['s1'], params['b1'])
    y = conv(y, params['w2'], params['s2'], params['b2'])
    return jnp.transpose(y, (0, 3, 1, 2))


# ----------------------------------------------------------------------------
# Main
# ----------------------------------------------------------------------------
if __name__ == "__main__":
    B, in_ch, out_ch, H, W = 2, 4, 8, 16, 16

    key = jax.random.PRNGKey(0)
    k_x, k_p = jax.random.split(key)
    x = jax.random.normal(k_x, (B, in_ch, H, W), jnp.float32)
    params = make_down_params(k_p, in_ch, out_ch)

    out = jax.block_until_ready(down_forward(x, params))
    assert out.shape == (B, out_ch, H // 2, W // 2), out.shape
    assert bool(jnp.all(jnp.isfinite(out)))

    ref = jax.block_until_ready(down_reference(x, params))
    assert bool(jnp.allclose(out, ref, rtol=1e-2, atol=1e-2)), (
        float(jnp.max(jnp.abs(out - ref))))

    print("KERNEL_OK")
</pallas_src>

<mosaic_0001>
module attributes {stable_mosaic.version = 11 : i64} {
  func.func @down_double_conv_kernel(%arg0: i32, %arg1: memref<1x8x8x4xf32, #tpu.memory_space<vmem>>, %arg2: memref<36x8xf32, #tpu.memory_space<vmem>>, %arg3: memref<1x8xf32, #tpu.memory_space<vmem>>, %arg4: memref<1x8xf32, #tpu.memory_space<vmem>>, %arg5: memref<72x8xf32, #tpu.memory_space<vmem>>, %arg6: memref<1x8xf32, #tpu.memory_space<vmem>>, %arg7: memref<1x8xf32, #tpu.memory_space<vmem>>, %arg8: memref<1x8x8x8xf32, #tpu.memory_space<vmem>>, %arg9: memref<10x10x4xf32, #tpu.memory_space<vmem>>, %arg10: memref<10x10x8xf32, #tpu.memory_space<vmem>>) attributes {dimension_semantics = [#tpu.dimension_semantics<parallel>], iteration_bounds = array<i64: 2>, scalar_prefetch = 0 : i64, scratch_operands = 2 : i64, tpu.core_type = #tpu.core_type<tc>, window_params = [{transform_indices = @transform_0, window_bounds = array<i64: 1, 8, 8, 4>}, {pipeline_mode = #tpu.pipeline_mode<synchronous>, transform_indices = @transform_1, window_bounds = array<i64: 36, 8>}, {pipeline_mode = #tpu.pipeline_mode<synchronous>, transform_indices = @transform_2, window_bounds = array<i64: 1, 8>}, {pipeline_mode = #tpu.pipeline_mode<synchronous>, transform_indices = @transform_3, window_bounds = array<i64: 1, 8>}, {pipeline_mode = #tpu.pipeline_mode<synchronous>, transform_indices = @transform_4, window_bounds = array<i64: 72, 8>}, {pipeline_mode = #tpu.pipeline_mode<synchronous>, transform_indices = @transform_5, window_bounds = array<i64: 1, 8>}, {pipeline_mode = #tpu.pipeline_mode<synchronous>, transform_indices = @transform_6, window_bounds = array<i64: 1, 8>}, {transform_indices = @transform_7, window_bounds = array<i64: 1, 8, 8, 8>}]} {
    %c0 = arith.constant 0 : index
    %c0_0 = arith.constant 0 : index
    %c0_1 = arith.constant 0 : index
    %c0_2 = arith.constant 0 : index
    %0 = vector.load %arg1[%c0, %c0_0, %c0_1, %c0_2] : memref<1x8x8x4xf32, #tpu.memory_space<vmem>>, vector<1x8x8x4xf32>
    %1 = vector.shape_cast %0 : vector<1x8x8x4xf32> to vector<8x8x4xf32>
    %cst = arith.constant 0.000000e+00 : f32
    %2 = vector.broadcast %cst : f32 to vector<10x10x4xf32>
    %c0_3 = arith.constant 0 : index
    %c0_4 = arith.constant 0 : index
    %c0_5 = arith.constant 0 : index
    %3 = vector.load %arg9[%c0_3, %c0_4, %c0_5] : memref<10x10x4xf32, #tpu.memory_space<vmem>>, vector<10x10x4xf32>
    tpu.vector_store %arg9[%c0_3, %c0_4, %c0_5], %2 {strides = array<i32>} : memref<10x10x4xf32, #tpu.memory_space<vmem>>, vector<10x10x4xf32>,
    %c1 = arith.constant 1 : index
    %c1_6 = arith.constant 1 : index
    %c0_7 = arith.constant 0 : index
    %4 = vector.load %arg9[%c1, %c1_6, %c0_7] : memref<10x10x4xf32, #tpu.memory_space<vmem>>, vector<8x8x4xf32>
    tpu.vector_store %arg9[%c1, %c1_6, %c0_7], %1 {strides = array<i32>} : memref<10x10x4xf32, #tpu.memory_space<vmem>>, vector<8x8x4xf32>,
    %c0_8 = arith.constant 0 : index
    %c0_9 = arith.constant 0 : index
    %c0_10 = arith.constant 0 : index
    %5 = vector.load %arg9[%c0_8, %c0_9, %c0_10] : memref<10x10x4xf32, #tpu.memory_space<vmem>>, vector<8x8x4xf32>
    %c0_11 = arith.constant 0 : index
    %c1_12 = arith.constant 1 : index
    %c0_13 = arith.constant 0 : index
    %6 = vector.load %arg9[%c0_11, %c1_12, %c0_13] : memref<10x10x4xf32, #tpu.memory_space<vmem>>, vector<8x8x4xf32>
    %c0_14 = arith.constant 0 : index
    %c2 = arith.constant 2 : index
    %c0_15 = arith.constant 0 : index
    %7 = vector.load %arg9[%c0_14, %c2, %c0_15] : memref<10x10x4xf32, #tpu.memory_space<vmem>>, vector<8x8x4xf32>
    %c1_16 = arith.constant 1 : index
    %c0_17 = arith.constant 0 : index
    %c0_18 = arith.constant 0 : index
    %8 = vector.load %arg9[%c1_16, %c0_17, %c0_18] : memref<10x10x4xf32, #tpu.memory_space<vmem>>, vector<8x8x4xf32>
    %c1_19 = arith.constant 1 : index
    %c1_20 = arith.constant 1 : index
    %c0_21 = arith.constant 0 : index
    %9 = vector.load %arg9[%c1_19, %c1_20, %c0_21] : memref<10x10x4xf32, #tpu.memory_space<vmem>>, vector<8x8x4xf32>
    %c1_22 = arith.constant 1 : index
    %c2_23 = arith.constant 2 : index
    %c0_24 = arith.constant 0 : index
    %10 = vector.load %arg9[%c1_22, %c2_23, %c0_24] : memref<10x10x4xf32, #tpu.memory_space<vmem>>, vector<8x8x4xf32>
    %c2_25 = arith.constant 2 : index
    %c0_26 = arith.constant 0 : index
    %c0_27 = arith.constant 0 : index
    %11 = vector.load %arg9[%c2_25, %c0_26, %c0_27] : memref<10x10x4xf32, #tpu.memory_space<vmem>>, vector<8x8x4xf32>
    %c2_28 = arith.constant 2 : index
    %c1_29 = arith.constant 1 : index
    %c0_30 = arith.constant 0 : index
    %12 = vector.load %arg9[%c2_28, %c1_29, %c0_30] : memref<10x10x4xf32, #tpu.memory_space<vmem>>, vector<8x8x4xf32>
    %c2_31 = arith.constant 2 : index
    %c2_32 = arith.constant 2 : index
    %c0_33 = arith.constant 0 : index
    %13 = vector.load %arg9[%c2_31, %c2_32, %c0_33] : memref<10x10x4xf32, #tpu.memory_space<vmem>>, vector<8x8x4xf32>
    %14 = tpu.concatenate %5, %6, %7, %8, %9, %10, %11, %12, %13 in 2 : vector<8x8x4xf32>, vector<8x8x4xf32>, vector<8x8x4xf32>, vector<8x8x4xf32>, vector<8x8x4xf32>, vector<8x8x4xf32>, vector<8x8x4xf32>, vector<8x8x4xf32>, vector<8x8x4xf32> -> vector<8x8x36xf32>
    %15 = vector.shape_cast %14 : vector<8x8x36xf32> to vector<64x36xf32>
    %c0_34 = arith.constant 0 : index
    %c0_35 = arith.constant 0 : index
    %16 = vector.load %arg2[%c0_34, %c0_35] : memref<36x8xf32, #tpu.memory_space<vmem>>, vector<36x8xf32>
    %cst_36 = arith.constant dense<0.000000e+00> : vector<64x8xf32>
    %17 = tpu.matmul %15, %16, %cst_36 {dimension_numbers = #tpu.dot_dimension_numbers<[1], [0], [0], [1], [0, 0, 1, 1], [], []>} : vector<64x36xf32>, vector<36x8xf32>, vector<64x8xf32> -> vector<64x8xf32>
    %c0_37 = arith.constant 0 : index
    %c0_38 = arith.constant 0 : index
    %18 = vector.load %arg3[%c0_37, %c0_38] : memref<1x8xf32, #tpu.memory_space<vmem>>, vector<1x8xf32>
    %19 = vector.broadcast %18 : vector<1x8xf32> to vector<64x8xf32>
    %20 = arith.mulf %17, %19 : vector<64x8xf32>
    %c0_39 = arith.constant 0 : index
    %c0_40 = arith.constant 0 : index
    %21 = vector.load %arg4[%c0_39, %c0_40] : memref<1x8xf32, #tpu.memory_space<vmem>>, vector<1x8xf32>
    %22 = vector.broadcast %21 : vector<1x8xf32> to vector<64x8xf32>
    %23 = arith.addf %20, %22 : vector<64x8xf32>
    %cst_41 = arith.constant 0.000000e+00 : f32
    %24 = vector.broadcast %cst_41 : f32 to vector<64x8xf32>
    %25 = arith.maximumf %23, %24 : vector<64x8xf32>
    %26 = vector.shape_cast %25 : vector<64x8xf32> to vector<8x8x8xf32>
    %cst_42 = arith.constant 0.000000e+00 : f32
    %27 = vector.broadcast %cst_42 : f32 to vector<10x10x8xf32>
    %c0_43 = arith.constant 0 : index
    %c0_44 = arith.constant 0 : index
    %c0_45 = arith.constant 0 : index
    %28 = vector.load %arg10[%c0_43, %c0_44, %c0_45] : memref<10x10x8xf32, #tpu.memory_space<vmem>>, vector<10x10x8xf32>
    tpu.vector_store %arg10[%c0_43, %c0_44, %c0_45], %27 {strides = array<i32>} : memref<10x10x8xf32, #tpu.memory_space<vmem>>, vector<10x10x8xf32>,
    %c1_46 = arith.constant 1 : index
    %c1_47 = arith.constant 1 : index
    %c0_48 = arith.constant 0 : index
    %29 = vector.load %arg10[%c1_46, %c1_47, %c0_48] : memref<10x10x8xf32, #tpu.memory_space<vmem>>, vector<8x8x8xf32>
    tpu.vector_store %arg10[%c1_46, %c1_47, %c0_48], %26 {strides = array<i32>} : memref<10x10x8xf32, #tpu.memory_space<vmem>>, vector<8x8x8xf32>,
    %c0_49 = arith.constant 0 : index
    %c0_50 = arith.constant 0 : index
    %c0_51 = arith.constant 0 : index
    %30 = vector.load %arg10[%c0_49, %c0_50, %c0_51] : memref<10x10x8xf32, #tpu.memory_space<vmem>>, vector<8x8x8xf32>
    %c0_52 = arith.constant 0 : index
    %c1_53 = arith.constant 1 : index
    %c0_54 = arith.constant 0 : index
    %31 = vector.load %arg10[%c0_52, %c1_53, %c0_54] : memref<10x10x8xf32, #tpu.memory_space<vmem>>, vector<8x8x8xf32>
    %c0_55 = arith.constant 0 : index
    %c2_56 = arith.constant 2 : index
    %c0_57 = arith.constant 0 : index
    %32 = vector.load %arg10[%c0_55, %c2_56, %c0_57] : memref<10x10x8xf32, #tpu.memory_space<vmem>>, vector<8x8x8xf32>
    %c1_58 = arith.constant 1 : index
    %c0_59 = arith.constant 0 : index
    %c0_60 = arith.constant 0 : index
    %33 = vector.load %arg10[%c1_58, %c0_59, %c0_60] : memref<10x10x8xf32, #tpu.memory_space<vmem>>, vector<8x8x8xf32>
    %c1_61 = arith.constant 1 : index
    %c1_62 = arith.constant 1 : index
    %c0_63 = arith.constant 0 : index
    %34 = vector.load %arg10[%c1_61, %c1_62, %c0_63] : memref<10x10x8xf32, #tpu.memory_space<vmem>>, vector<8x8x8xf32>
    %c1_64 = arith.constant 1 : index
    %c2_65 = arith.constant 2 : index
    %c0_66 = arith.constant 0 : index
    %35 = vector.load %arg10[%c1_64, %c2_65, %c0_66] : memref<10x10x8xf32, #tpu.memory_space<vmem>>, vector<8x8x8xf32>
    %c2_67 = arith.constant 2 : index
    %c0_68 = arith.constant 0 : index
    %c0_69 = arith.constant 0 : index
    %36 = vector.load %arg10[%c2_67, %c0_68, %c0_69] : memref<10x10x8xf32, #tpu.memory_space<vmem>>, vector<8x8x8xf32>
    %c2_70 = arith.constant 2 : index
    %c1_71 = arith.constant 1 : index
    %c0_72 = arith.constant 0 : index
    %37 = vector.load %arg10[%c2_70, %c1_71, %c0_72] : memref<10x10x8xf32, #tpu.memory_space<vmem>>, vector<8x8x8xf32>
    %c2_73 = arith.constant 2 : index
    %c2_74 = arith.constant 2 : index
    %c0_75 = arith.constant 0 : index
    %38 = vector.load %arg10[%c2_73, %c2_74, %c0_75] : memref<10x10x8xf32, #tpu.memory_space<vmem>>, vector<8x8x8xf32>
    %39 = tpu.concatenate %30, %31, %32, %33, %34, %35, %36, %37, %38 in 2 : vector<8x8x8xf32>, vector<8x8x8xf32>, vector<8x8x8xf32>, vector<8x8x8xf32>, vector<8x8x8xf32>, vector<8x8x8xf32>, vector<8x8x8xf32>, vector<8x8x8xf32>, vector<8x8x8xf32> -> vector<8x8x72xf32>
    %40 = vector.shape_cast %39 : vector<8x8x72xf32> to vector<64x72xf32>
    %c0_76 = arith.constant 0 : index
    %c0_77 = arith.constant 0 : index
    %41 = vector.load %arg5[%c0_76, %c0_77] : memref<72x8xf32, #tpu.memory_space<vmem>>, vector<72x8xf32>
    %cst_78 = arith.constant dense<0.000000e+00> : vector<64x8xf32>
    %42 = tpu.matmul %40, %41, %cst_78 {dimension_numbers = #tpu.dot_dimension_numbers<[1], [0], [0], [1], [0, 0, 1, 1], [], []>} : vector<64x72xf32>, vector<72x8xf32>, vector<64x8xf32> -> vector<64x8xf32>
    %c0_79 = arith.constant 0 : index
    %c0_80 = arith.constant 0 : index
    %43 = vector.load %arg6[%c0_79, %c0_80] : memref<1x8xf32, #tpu.memory_space<vmem>>, vector<1x8xf32>
    %44 = vector.broadcast %43 : vector<1x8xf32> to vector<64x8xf32>
    %45 = arith.mulf %42, %44 : vector<64x8xf32>
    %c0_81 = arith.constant 0 : index
    %c0_82 = arith.constant 0 : index
    %46 = vector.load %arg7[%c0_81, %c0_82] : memref<1x8xf32, #tpu.memory_space<vmem>>, vector<1x8xf32>
    %47 = vector.broadcast %46 : vector<1x8xf32> to vector<64x8xf32>
    %48 = arith.addf %45, %47 : vector<64x8xf32>
    %cst_83 = arith.constant 0.000000e+00 : f32
    %49 = vector.broadcast %cst_83 : f32 to vector<64x8xf32>
    %50 = arith.maximumf %48, %49 : vector<64x8xf32>
    %51 = vector.shape_cast %50 : vector<64x8xf32> to vector<8x8x8xf32>
    %c0_84 = arith.constant 0 : index
    %c0_85 = arith.constant 0 : index
    %c0_86 = arith.constant 0 : index
    %c0_87 = arith.constant 0 : index
    %52 = vector.load %arg8[%c0_84, %c0_85, %c0_86, %c0_87] : memref<1x8x8x8xf32, #tpu.memory_space<vmem>>, vector<1x8x8x8xf32>
    %53 = vector.shape_cast %52 : vector<1x8x8x8xf32> to vector<8x8x8xf32>
    %54 = vector.shape_cast %51 : vector<8x8x8xf32> to vector<1x8x8x8xf32>
    tpu.vector_store %arg8[%c0_84, %c0_85, %c0_86, %c0_87], %54 {strides = array<i32>} : memref<1x8x8x8xf32, #tpu.memory_space<vmem>>, vector<1x8x8x8xf32>,
    return
  }
  func.func @transform_0(%arg0: i32) -> (i32, i32, i32, i32) {
    %c0_i32 = arith.constant 0 : i32
    %c0_i32_0 = arith.constant 0 : i32
    %c0_i32_1 = arith.constant 0 : i32
    %c0_i32_2 = arith.constant 0 : i32
    return %arg0, %c0_i32, %c0_i32_0, %c0_i32_1 : i32, i32, i32, i32
  }
  func.func @transform_1(%arg0: i32) -> (i32, i32) {
    %c0_i32 = arith.constant 0 : i32
    %c0_i32_0 = arith.constant 0 : i32
    %c0_i32_1 = arith.constant 0 : i32
    return %c0_i32, %c0_i32_0 : i32, i32
  }
  func.func @transform_2(%arg0: i32) -> (i32, i32) {
    %c0_i32 = arith.constant 0 : i32
    %c0_i32_0 = arith.constant 0 : i32
    %c0_i32_1 = arith.constant 0 : i32
    return %c0_i32, %c0_i32_0 : i32, i32
  }
  func.func @transform_3(%arg0: i32) -> (i32, i32) {
    %c0_i32 = arith.constant 0 : i32
    %c0_i32_0 = arith.constant 0 : i32
    %c0_i32_1 = arith.constant 0 : i32
    return %c0_i32, %c0_i32_0 : i32, i32
  }
  func.func @transform_4(%arg0: i32) -> (i32, i32) {
    %c0_i32 = arith.constant 0 : i32
    %c0_i32_0 = arith.constant 0 : i32
    %c0_i32_1 = arith.constant 0 : i32
    return %c0_i32, %c0_i32_0 : i32, i32
  }
  func.func @transform_5(%arg0: i32) -> (i32, i32) {
    %c0_i32 = arith.constant 0 : i32
    %c0_i32_0 = arith.constant 0 : i32
    %c0_i32_1 = arith.constant 0 : i32
    return %c0_i32, %c0_i32_0 : i32, i32
  }
  func.func @transform_6(%arg0: i32) -> (i32, i32) {
    %c0_i32 = arith.constant 0 : i32
    %c0_i32_0 = arith.constant 0 : i32
    %c0_i32_1 = arith.constant 0 : i32
    return %c0_i32, %c0_i32_0 : i32, i32
  }
  func.func @transform_7(%arg0: i32) -> (i32, i32, i32, i32) {
    %c0_i32 = arith.constant 0 : i32
    %c0_i32_0 = arith.constant 0 : i32
    %c0_i32_1 = arith.constant 0 : i32
    %c0_i32_2 = arith.constant 0 : i32
    return %arg0, %c0_i32, %c0_i32_0, %c0_i32_1 : i32, i32, i32, i32
  }
}

</mosaic_0001>

<bundles_post_ra>
// kernel: down_forward.1
= control target key start
LH: loop header
LB: loop body
LE: loop exit
PB: predicated region body
PF: predicated region fallthrough
CT: control target
= control target key end

     0   :  { %s1552_s24 = smov 0   ;;  %s2172_s0 = inlined_call_operand.vmem [shape: f32[2,8,8,4], index: 0, kind: input, shape index: {}]   ;;  %s2173_s1 = inlined_call_operand.vmem [shape: f32[36,8], index: 1, kind: input, shape index: {}]   ;;  %s2174_s2 = inlined_call_operand.vmem [shape: f32[1,8], index: 2, kind: input, shape index: {}]   ;;  %s2175_s3 = inlined_call_operand.vmem [shape: f32[1,8], index: 3, kind: input, shape index: {}]   ;;  %s2176_s4 = inlined_call_operand.vmem [shape: f32[72,8], index: 4, kind: input, shape index: {}]   ;;  %s2177_s5 = inlined_call_operand.vmem [shape: f32[1,8], index: 5, kind: input, shape index: {}]   ;;  %s2178_s6 = inlined_call_operand.vmem [shape: f32[1,8], index: 6, kind: input, shape index: {}]   ;;  %s2179_s7 = inlined_call_operand.vmem [shape: f32[2,8,8,8], index: 7, kind: output, shape index: {}]  }
   0x1 LB: > { %s1422_s25 = sadd.s32 4294967295, %s1497_s24   ;;  %p1426_p0 = scmp.ge.s32.totalorder %s1497_s24, 1  ;;  %s1497_s24 = sphi %s1552_s24, %s17_s24  }
   0x2   : > { %p237_p1 = scmp.lt.s32.totalorder %s1497_s24, 3 }
   0x4   : > { %p238_p2 = pnand %p1426_p0, %p237_p1 }
   0x5   : > { %p269_p3 = scmp.lt.s32.totalorder (!%p238_p2), %s1422_s25, 1  ;;  %s1500_s26 = smov (!%p238_p2), 4  }
   0x6   : > { %241 = sbr.rel (%p238_p2) target bundleno = 807 (0x327), region = 48  ;;  %s1501_s8 = smov (!%p238_p2), 8  }
   0x7   : > { %s1502_s9 = smov (!%p238_p2), 12   ;;  %s1503_s10 = smov (!%p238_p2), 20  }
   0x8   : > { %s1504_s11 = smov (!%p238_p2), 28   ;;  %s1505_s12 = smov (!%p238_p2), 16  }
   0x9   : > { %s1506_s13 = smov (!%p238_p2), 24   ;;  %s1507_s14 = smov (!%p238_p2), 32  }
   0xa   : > { %s1510_s15 = smov (!%p238_p2), 56   ;;  %s1511_s16 = smov (!%p238_p2), 48  }
   0xb   : > { %vm287_vm0 = vcmask 31744   ;;  %vm289_vm1 = vcmask 25600   ;;  %v1499_v0 = vmov 0.0   ;;  %s2181_s25 = smov (!%p269_p3, %s1422_s25), 1  ;;  %vm655_vm2 = vcmask 64512   ;;  %v721_v29 = vld [vmem:[%s2173_s1 + $0x18] sm:$0xff] }
   0xc   : > { %288 = vst.msk [vmem:[#allocation2] sm:$0xff] %vm287_vm0, %v1499_v0  ;;  %s1450_s27 = sshll.u32 %s2181_s25, 6  ;;  %v722_v28 = vld [vmem:[%s2173_s1 + $0x20] sm:$0xf]  ;;  %vm748_vm3 = vcmask 1043456   ;;  %v720_v32 = vld [vmem:[%s2173_s1 + $0x10] sm:$0xff] }
   0xd   : > { %290 = vst.msk [vmem:[#allocation2 + $0x8] sm:$0x3] %vm289_vm1, %v1499_v0  ;;  %s1599_s30 = scalar_lea.vmem %s2172_s0, %s1450_s27  ;;  %1431 = vmatpush.msk.msra.mxu0 %vm748_vm3, %v722_v28  ;;  %1452 = vmatpush.msk.msra.mxu3 %vm748_vm3, %v722_v28  ;;  %v719_v34 = vld [vmem:[%s2173_s1 + $0x8] sm:$0xff]  ;;  %v718_v37 = vld [vmem:[%s2173_s1] sm:$0xff]  ;;  %vm664_vm4 = vcmask 97280   ;;  %vm673_vm5 = vcmask 130048  }
   0xe   : > { %291 = vst.msk [vmem:[#allocation2 + $0x10] sm:$0xff] %vm287_vm0, %v1499_v0  ;;  %v279_v3 = vld [vmem:[%s1599_s30] sm:$0xff]  ;;  %v280_v4 = vld [vmem:[%s1599_s30 + $0x8] sm:$0xff]  ;;  %v281_v5 = vld [vmem:[%s1599_s30 + $0x10] sm:$0xff]  ;;  %vm682_vm6 = vcmask 162816   ;;  %vm691_vm7 = vcmask 195584  }
   0xf   : > { %292 = vst.msk [vmem:[#allocation2 + $0x18] sm:$0x3] %vm289_vm1, %v1499_v0  ;;  %v282_v11 = vld [vmem:[%s1599_s30 + $0x18] sm:$0xff]  ;;  %v283_v16 = vld [vmem:[%s1599_s30 + $0x20] sm:$0xff]  ;;  %v284_v18 = vld [vmem:[%s1599_s30 + $0x28] sm:$0xff]  ;;  %764 = vmatpush.msra.mxu0 %v721_v29  ;;  %1453 = vmatpush.msra.mxu3 %v721_v29  ;;  %vm700_vm8 = vcmask 228352  }
  0x10   : > { %293 = vst.msk [vmem:[#allocation2 + $0x20] sm:$0xff] %vm287_vm0, %v1499_v0  ;;  %v285_v22 = vld [vmem:[%s1599_s30 + $0x30] sm:$0xff]  ;;  %v286_v35 = vld [vmem:[%s1599_s30 + $0x38] sm:$0xff]  ;;  %vm709_vm9 = vcmask 261120   ;;  %vm723_vm10 = vcmask 293888   ;;  %vm826_vm11 = vcmask 58368  }
  0x11   : > { %294 = vst.msk [vmem:[#allocation2 + $0x28] sm:$0x3] %vm289_vm1, %v1499_v0  ;;  %765 = vmatpush.msra.mxu0 %v720_v32  ;;  %1454 = vmatpush.msra.mxu3 %v720_v32  ;;  %vm1216_vm12 = vcmask 326656   ;;  %vm1225_vm13 = vcmask 392192   ;;  %vm1234_vm14 = vcmask 457728   ;;  %vm1243_vm15 = vcmask 523264  }
  0x12   : > { %295 = vst.msk [vmem:[#allocation2 + $0x30] sm:$0xff] %vm287_vm0, %v1499_v0 }
  0x13   : > { %296 = vst.msk [vmem:[#allocation2 + $0x38] sm:$0x3] %vm289_vm1, %v1499_v0  ;;  %766 = vmatpush.msra.mxu0 %v719_v34  ;;  %1455 = vmatpush.msra.mxu3 %v719_v34  ;;  %v318_v44 = vld [vmem:[#allocation2] sm:$0xff] }
  0x14   : > { %v326_v1 = vld [vmem:[#allocation2 + $0x1] sm:$0xff]  ;;  %297 = vst.msk [vmem:[#allocation2 + $0x40] sm:$0xff] %vm287_vm0, %v1499_v0 }
  0x15   : > { %399 = vrot.lane.b32.xlu0 %v326_v1, %s1500_s26  ;;  %298 = vst.msk [vmem:[#allocation2 + $0x48] sm:$0x3] %vm289_vm1, %v1499_v0  ;;  %v334_v2 = vld [vmem:[#allocation2 + $0x2] sm:$0xff]  ;;  %767 = vmatpush.msra.mxu0 %v718_v37 }
  0x16   : > { %299 = vst.msk [vmem:[#allocation2 + $0x50] sm:$0xff] %vm287_vm0, %v1499_v0  ;;  %1456 = vmatpush.msra.mxu3 %v718_v37 }
  0x17   : > { %300 = vst.msk [vmem:[#allocation2 + $0x58] sm:$0x3] %vm289_vm1, %v1499_v0 }
  0x18   : > { %301 = vst.msk [vmem:[#allocation2 + $0x60] sm:$0xff] %vm287_vm0, %v1499_v0 }
  0x19   : > { %302 = vst.msk [vmem:[#allocation2 + $0x68] sm:$0x3] %vm289_vm1, %v1499_v0 }
  0x1a   : > { %303 = vst.msk [vmem:[#allocation2 + $0x70] sm:$0xff] %vm287_vm0, %v1499_v0 }
  0x1b   : > { %304 = vst.msk [vmem:[#allocation2 + $0x78] sm:$0x3] %vm289_vm1, %v1499_v0 }
  0x1c   : > { %305 = vst.msk [vmem:[#allocation2 + $0x80] sm:$0xff] %vm287_vm0, %v1499_v0 }
  0x1d   : > { %306 = vst.msk [vmem:[#allocation2 + $0x88] sm:$0x3] %vm289_vm1, %v1499_v0  ;;  %431 = vrot.lane.b32.xlu0 %v334_v2, %s1501_s8 }
  0x1e   : > { %307 = vst.msk [vmem:[#allocation2 + $0x90] sm:$0xff] %vm287_vm0, %v1499_v0 }
  0x1f   : > { %308 = vst.msk [vmem:[#allocation2 + $0x98] sm:$0x3] %vm289_vm1, %v1499_v0 }
  0x20   : > { %310 = vst.msk [vmem:[#allocation2 + $0x11] sm:$0xff] %vm287_vm0, %v279_v3 }
  0x21   : > { %311 = vst.msk [vmem:[#allocation2 + $0x21] sm:$0xff] %vm287_vm0, %v280_v4 }
  0x22   : > { %312 = vst.msk [vmem:[#allocation2 + $0x31] sm:$0xff] %vm287_vm0, %v281_v5 }
  0x23   : > { %313 = vst.msk [vmem:[#allocation2 + $0x41] sm:$0xff] %vm287_vm0, %v282_v11 }
  0x24   : > { %314 = vst.msk [vmem:[#allocation2 + $0x51] sm:$0xff] %vm287_vm0, %v283_v16 }
  0x25   : > { %315 = vst.msk [vmem:[#allocation2 + $0x61] sm:$0xff] %vm287_vm0, %v284_v18 }
  0x26   : > { %316 = vst.msk [vmem:[#allocation2 + $0x71] sm:$0xff] %vm287_vm0, %v285_v22  ;;  %v390_v16 = vld [vmem:[#allocation2 + $0x92] sm:$0xff] }
  0x27   : > { %v1618_v6 = vld [vmem:[#allocation2 + $0x10] sm:$0xff]  ;;  %825 = vst.msk [vmem:[#allocation3] sm:$0xff] %vm655_vm2, %v1499_v0 }
  0x28   : > { %v335_v7 = vld [vmem:[#allocation2 + $0x12] sm:$0xff]  ;;  %463 = vrot.lane.b32.xlu1 %v1618_v6, %s1502_s9  ;;  %v375_v8 = vld [vmem:[#allocation2 + $0x21] sm:$0xff]  ;;  %828 = vst.msk [vmem:[#allocation3 + $0x10] sm:$0xff] %vm655_vm2, %v1499_v0 }
  0x29   : > { %527 = vrot.lane.b32.xlu2 %v335_v7, %s1503_s10  ;;  %591 = vrot.lane.b32.xlu0 %v375_v8, %s1504_s11  ;;  %v350_v9 = vld [vmem:[#allocation2 + $0x11] sm:$0xff]  ;;  %v1624_v10 = vld [vmem:[#allocation2 + $0x20] sm:$0xff]  ;;  %830 = vst.msk [vmem:[#allocation3 + $0x20] sm:$0xff] %vm655_vm2, %v1499_v0 }
  0x2a   : > { %v383_v12 = vld [vmem:[#allocation2 + $0x22] sm:$0xff]  ;;  %v384_v13 = vld [vmem:[#allocation2 + $0x32] sm:$0xff]  ;;  %832 = vst.msk [vmem:[#allocation3 + $0x30] sm:$0xff] %vm655_vm2, %v1499_v0 }
  0x2b   : > { %v1639_v14 = vld [vmem:[#allocation2 + $0x30] sm:$0xff]  ;;  %v1648_v17 = vld [vmem:[#allocation2 + $0x40] sm:$0xff]  ;;  %834 = vst.msk [vmem:[#allocation3 + $0x40] sm:$0xff] %vm655_vm2, %v1499_v0 }
  0x2c   : > { %v352_v15 = vld [vmem:[#allocation2 + $0x31] sm:$0xff]  ;;  %v377_v19 = vld [vmem:[#allocation2 + $0x41] sm:$0xff]  ;;  %836 = vst.msk [vmem:[#allocation3 + $0x50] sm:$0xff] %vm655_vm2, %v1499_v0 }
  0x2d   : > { %v361_v20 = vld [vmem:[#allocation2 + $0x42] sm:$0xff]  ;;  %v1662_v21 = vld [vmem:[#allocation2 + $0x50] sm:$0xff]  ;;  %838 = vst.msk [vmem:[#allocation3 + $0x60] sm:$0xff] %vm655_vm2, %v1499_v0 }
  0x2e   : > { %v331_v23 = vld [vmem:[#allocation2 + $0x51] sm:$0xff]  ;;  %v1671_v24 = vld [vmem:[#allocation2 + $0x60] sm:$0xff]  ;;  %840 = vst.msk [vmem:[#allocation3 + $0x70] sm:$0xff] %vm655_vm2, %v1499_v0 }
  0x2f   : > { %v339_v25 = vld [vmem:[#allocation2 + $0x52] sm:$0xff]  ;;  %v355_v26 = vld [vmem:[#allocation2 + $0x61] sm:$0xff]  ;;  %842 = vst.msk [vmem:[#allocation3 + $0x80] sm:$0xff] %vm655_vm2, %v1499_v0 }
  0x30   : > { %495 = vrot.lane.b32.xlu1 %v350_v9, %s1505_s12  ;;  %844 = vst.msk [vmem:[#allocation3 + $0x90] sm:$0xff] %vm655_vm2, %v1499_v0  ;;  %v363_v30 = vld [vmem:[#allocation2 + $0x62] sm:$0xff]  ;;  %v1710_v31 = vld [vmem:[#allocation2 + $0x71] sm:$0xff] }
  0x31   : > { %559 = vrot.lane.b32.xlu2 %v1624_v10, %s1506_s13  ;;  %433 = vrot.lane.b32.xlu0 %v335_v7, %s1501_s8  ;;  %317 = vst.msk [vmem:[#allocation2 + $0x81] sm:$0xff] %vm287_vm0, %v286_v35  ;;  %v1727_v38 = vld [vmem:[#allocation2 + $0x70] sm:$0xff] }
  0x32   : > { %v388_v41 = vld [vmem:[#allocation2 + $0x72] sm:$0xff]  ;;  %829 = vst.msk [vmem:[#allocation3 + $0x18] sm:$0x3] %vm826_vm11, %v1499_v0 }
  0x33   : > { %827 = vst.msk [vmem:[#allocation3 + $0x8] sm:$0x3] %vm826_vm11, %v1499_v0 }
  0x34   : > { %831 = vst.msk [vmem:[#allocation3 + $0x28] sm:$0x3] %vm826_vm11, %v1499_v0 }
  0x35   : > { %833 = vst.msk [vmem:[#allocation3 + $0x38] sm:$0x3] %vm826_vm11, %v1499_v0 }
  0x36   : > { %835 = vst.msk [vmem:[#allocation3 + $0x48] sm:$0x3] %vm826_vm11, %v1499_v0 }
  0x37   : > { %837 = vst.msk [vmem:[#allocation3 + $0x58] sm:$0x3] %vm826_vm11, %v1499_v0 }
  0x38   : > { %623 = vrot.lane.b32.xlu1 %v383_v12, %s1507_s14  ;;  %v381_v54 = vld [vmem:[#allocation2 + $0x81] sm:$0xff]  ;;  %839 = vst.msk [vmem:[#allocation3 + $0x68] sm:$0x3] %vm826_vm11, %v1499_v0 }
  0x39   : > { %401 = vrot.lane.b32.xlu2 %v350_v9, %s1500_s26  ;;  %529 = vrot.lane.b32.xlu0 %v383_v12, %s1503_s10  ;;  %v373_v61 = vld [vmem:[#allocation2 + $0x80] sm:$0xff]  ;;  %841 = vst.msk [vmem:[#allocation3 + $0x78] sm:$0x3] %vm826_vm11, %v1499_v0 }
  0x3a   : > { %v389_v5 = vld [vmem:[#allocation2 + $0x82] sm:$0xff]  ;;  %843 = vst.msk [vmem:[#allocation3 + $0x88] sm:$0x3] %vm826_vm11, %v1499_v0 }
  0x3b   : > { %845 = vst.msk [vmem:[#allocation3 + $0x98] sm:$0x3] %vm826_vm11, %v1499_v0 }
  0x40   : > { %465 = vrot.lane.b32.xlu1 %v1624_v10, %s1502_s9 }
  0x41   : > { %497 = vrot.lane.b32.xlu2 %v375_v8, %s1505_s12  ;;  %625 = vrot.lane.b32.xlu0 %v384_v13, %s1507_s14 }
  0x48   : > { %561 = vrot.lane.b32.xlu1 %v1639_v14, %s1506_s13 }
  0x49   : > { %593 = vrot.lane.b32.xlu2 %v352_v15, %s1504_s11  ;;  %467 = vrot.lane.b32.xlu0 %v1639_v14, %s1502_s9 }
  0x50   : > { %403 = vrot.lane.b32.xlu1 %v375_v8, %s1500_s26 }
  0x51   : > { %435 = vrot.lane.b32.xlu2 %v383_v12, %s1501_s8  ;;  %563 = vrot.lane.b32.xlu0 %v1648_v17, %s1506_s13 }
  0x58   : > { %499 = vrot.lane.b32.xlu1 %v352_v15, %s1505_s12 }
  0x59   : > { %531 = vrot.lane.b32.xlu2 %v384_v13, %s1503_s10  ;;  %405 = vrot.lane.b32.xlu0 %v352_v15, %s1500_s26 }
  0x60   : > { %595 = vrot.lane.b32.xlu1 %v377_v19, %s1504_s11 }
  0x61   : > { %627 = vrot.lane.b32.xlu2 %v361_v20, %s1507_s14  ;;  %501 = vrot.lane.b32.xlu0 %v377_v19, %s1505_s12 }
  0x68   : > { %437 = vrot.lane.b32.xlu1 %v384_v13, %s1501_s8 }
  0x69   : > { %469 = vrot.lane.b32.xlu2 %v1648_v17, %s1502_s9  ;;  %565 = vrot.lane.b32.xlu0 %v1662_v21, %s1506_s13 }
  0x70   : > { %533 = vrot.lane.b32.xlu1 %v361_v20, %s1503_s10 }
  0x71   : > { %409 = vrot.lane.b32.xlu2 %v331_v23, %s1500_s26  ;;  %473 = vrot.lane.b32.xlu0 %v1671_v24, %s1502_s9 }
  0x78   : > { %441 = vrot.lane.b32.xlu1 %v339_v25, %s1501_s8 }
  0x79   : > { %597 = vrot.lane.b32.xlu2 %v331_v23, %s1504_s11  ;;  %505 = vrot.lane.b32.xlu0 %v355_v26, %s1505_s12 }
  0x80   : > { %629 = vrot.lane.b32.xlu1 %v339_v25, %s1507_s14 }
  0x81   : > { %407 = vrot.lane.b32.xlu2 %v377_v19, %s1500_s26  ;;  %471 = vrot.lane.b32.xlu0 %v1662_v21, %s1502_s9 }
  0x83   : > { %v528_v27 = vpop.permute.xlu2 %527 }
  0x87   : > { %v400_v33 = vpop.permute.xlu0 %399 }
  0x88   : > { %439 = vrot.lane.b32.xlu1 %v361_v20, %s1501_s8  ;;  %v647_v46 = vsel %vm287_vm0, %v318_v44, %v400_v33 }
  0x89   : > { %537 = vrot.lane.b32.xlu2 %v363_v30, %s1503_s10  ;;  %601 = vrot.lane.b32.xlu0 %v1710_v31, %s1504_s11 }
  0x8b   : > { %v560_v36 = vpop.permute.xlu2 %559 }
  0x8f   : > { %v432_v39 = vpop.permute.xlu0 %431 }
  0x90   : > { %569 = vrot.lane.b32.xlu1 %v1727_v38, %s1506_s13  ;;  %v656_v47 = vsel %vm655_vm2, %v647_v46, %v432_v39 }
  0x91   : > { %503 = vrot.lane.b32.xlu2 %v331_v23, %s1505_s12  ;;  %411 = vrot.lane.b32.xlu0 %v355_v26, %s1500_s26  ;;  %v374_v23 = vld [vmem:[#allocation2 + $0x90] sm:$0xff] }
  0x93   : > { %v402_v40 = vpop.permute.xlu2 %401 }
  0x94   : > { %v648_v62 = vsel %vm287_vm0, %v1618_v6, %v402_v40 }
  0x98   : > { %535 = vrot.lane.b32.xlu1 %v339_v25, %s1503_s10 }
  0x99   : > { %633 = vrot.lane.b32.xlu2 %v388_v41, %s1507_s14  ;;  %599 = vrot.lane.b32.xlu0 %v355_v26, %s1504_s11 }
  0x9a   : > { %v464_v42 = vpop.permute.xlu1 %463 }
  0x9b   : > { %v498_v43 = vpop.permute.xlu2 %497  ;;  %v592_v45 = vpop.permute.xlu0 %591  ;;  %v665_v48 = vsel %vm664_vm4, %v656_v47, %v464_v42 }
  0xa0   : > { %567 = vrot.lane.b32.xlu1 %v1671_v24, %s1506_s13 }
  0xa1   : > { %443 = vrot.lane.b32.xlu2 %v363_v30, %s1501_s8  ;;  %507 = vrot.lane.b32.xlu0 %v1710_v31, %s1505_s12 }
  0xa2   : > { %v496_v49 = vpop.permute.xlu1 %495 }
  0xa3   : > { %v594_v50 = vpop.permute.xlu2 %593  ;;  %v674_v51 = vsel %vm673_vm5, %v665_v48, %v496_v49  ;;  %v434_v52 = vpop.permute.xlu0 %433 }
  0xa4   : > { %v683_v53 = vsel %vm682_vm6, %v674_v51, %v528_v27  ;;  %v657_v2 = vsel %vm655_vm2, %v648_v62, %v434_v52 }
  0xa5   : > { %v692_v55 = vsel %vm691_vm7, %v683_v53, %v560_v36 }
  0xa6   : > { %v701_v56 = vsel %vm700_vm8, %v692_v55, %v592_v45 }
  0xa8   : > { %475 = vrot.lane.b32.xlu1 %v1727_v38, %s1502_s9 }
  0xa9   : > { %631 = vrot.lane.b32.xlu2 %v363_v30, %s1507_s14  ;;  %603 = vrot.lane.b32.xlu0 %v381_v54, %s1504_s11 }
  0xaa   : > { %v624_v57 = vpop.permute.xlu1 %623 }
  0xab   : > { %v436_v58 = vpop.permute.xlu2 %435  ;;  %v710_v59 = vsel %vm709_vm9, %v701_v56, %v624_v57  ;;  %v530_v60 = vpop.permute.xlu0 %529 }
  0xac   : > { %1432 = vmatmul.msk.f32.vlgmr.msra.gmra.mxu0 %vm723_vm10, %v710_v59 }
  0xb0   : > { %539 = vrot.lane.b32.xlu1 %v388_v41, %s1503_s10 }
  0xb1   : > { %571 = vrot.lane.b32.xlu2 %v373_v61, %s1506_s13  ;;  %445 = vrot.lane.b32.xlu0 %v388_v41, %s1501_s8 }
  0xb2   : > { %v466_v63 = vpop.permute.xlu1 %465 }
  0xb3   : > { %v532_v1 = vpop.permute.xlu2 %531  ;;  %v626_v3 = vpop.permute.xlu0 %625  ;;  %v666_v4 = vsel %vm664_vm4, %v657_v2, %v466_v63 }
  0xb4   : > { %v675_v7 = vsel %vm673_vm5, %v666_v4, %v498_v43 }
  0xb5   : > { %v684_v8 = vsel %vm682_vm6, %v675_v7, %v530_v60 }
  0xb8   : > { %635 = vrot.lane.b32.xlu1 %v389_v5, %s1507_s14 }
  0xb9   : > { %413 = vrot.lane.b32.xlu2 %v1710_v31, %s1500_s26  ;;  %541 = vrot.lane.b32.xlu0 %v389_v5, %s1503_s10  ;;  %v382_v31 = vld [vmem:[#allocation2 + $0x91] sm:$0xff]  ;;  %s1508_s10 = smov 40  }
  0xba   : > { %v562_v6 = vpop.permute.xlu1 %561 }
  0xbb   : > { %v628_v9 = vpop.permute.xlu2 %627  ;;  %v693_v11 = vsel %vm691_vm7, %v684_v8, %v562_v6  ;;  %v468_v12 = vpop.permute.xlu0 %467 }
  0xbc   : > { %v702_v13 = vsel %vm700_vm8, %v693_v11, %v594_v50 }
  0xbd   : > { %v711_v15 = vsel %vm709_vm9, %v702_v13, %v626_v3  ;;  %v871_v13 = vld [vmem:[#allocation3 + $0x2] sm:$0xff] }
  0xbe   : > { %1433 = vmatmul.msk.f32.gmra.mxu0 %vm723_vm10, %v711_v15 }
  0xc0   : > { %477 = vrot.lane.b32.xlu1 %v373_v61, %s1502_s9 }
  0xc1   : > { %509 = vrot.lane.b32.xlu2 %v381_v54, %s1505_s12  ;;  %637 = vrot.lane.b32.xlu0 %v390_v16, %s1507_s14 }
  0xc2   : > { %v404_v18 = vpop.permute.xlu1 %403 }
  0xc3   : > { %v470_v19 = vpop.permute.xlu2 %469  ;;  %v564_v20 = vpop.permute.xlu0 %563  ;;  %v649_v22 = vsel %vm287_vm0, %v1624_v10, %v404_v18 }
  0xc4   : > { %v658_v25 = vsel %vm655_vm2, %v649_v22, %v436_v58 }
  0xc5   : > { %v667_v27 = vsel %vm664_vm4, %v658_v25, %v468_v12 }
  0xc8   : > { %573 = vrot.lane.b32.xlu1 %v374_v23, %s1506_s13 }
  0xc9   : > { %605 = vrot.lane.b32.xlu2 %v382_v31, %s1504_s11  ;;  %968 = vrot.lane.b32.xlu0 %v871_v13, %s1505_s12  ;;  %s1509_s11 = smov 64  }
  0xca   : > { %v500_v26 = vpop.permute.xlu1 %499 }
  0xcb   : > { %v406_v28 = vpop.permute.xlu0 %405  ;;  %v676_v29 = vsel %vm673_vm5, %v667_v27, %v500_v26  ;;  %v410_v30 = vpop.permute.xlu2 %409 }
  0xcc   : > { %v685_v32 = vsel %vm682_vm6, %v676_v29, %v532_v1  ;;  %v650_v42 = vsel %vm287_vm0, %v1639_v14, %v406_v28  ;;  %v652_v57 = vsel %vm287_vm0, %v1662_v21, %v410_v30 }
  0xcd   : > { %v694_v33 = vsel %vm691_vm7, %v685_v32, %v564_v20 }
  0xd2   : > { %v596_v10 = vpop.permute.xlu1 %595 }
  0xd3   : > { %v703_v34 = vsel %vm700_vm8, %v694_v33, %v596_v10  ;;  %v502_v35 = vpop.permute.xlu0 %501  ;;  %v598_v37 = vpop.permute.xlu2 %597 }
  0xd4   : > { %v712_v36 = vsel %vm709_vm9, %v703_v34, %v628_v9  ;;  %v1847_v34 = vld [vmem:[%s2174_s2] ss:$0 sm:$0xff] }
  0xd5   : > { %1434 = vmatmul.msk.f32.gmra.mxu0 %vm723_vm10, %v712_v36  ;;  %v1853_v36 = vld [vmem:[%s2175_s3] ss:$0 sm:$0xff] }
  0xda   : > { %v438_v39 = vpop.permute.xlu1 %437 }
  0xdb   : > { %v566_v40 = vpop.permute.xlu0 %565  ;;  %v408_v41 = vpop.permute.xlu2 %407  ;;  %v659_v45 = vsel %vm655_vm2, %v650_v42, %v438_v39 }
  0xdc   : > { %v668_v46 = vsel %vm664_vm4, %v659_v45, %v470_v19  ;;  %v651_v8 = vsel %vm287_vm0, %v1648_v17, %v408_v41  ;;  %v863_v17 = vld [vmem:[#allocation3 + $0x1] sm:$0xff] }
  0xdd   : > { %v677_v49 = vsel %vm673_vm5, %v668_v46, %v502_v35  ;;  %936 = vrot.lane.b32.xlu1 %v863_v17, %s1501_s8 }
  0xe2   : > { %v534_v43 = vpop.permute.xlu1 %533 }
  0xe3   : > { %v474_v44 = vpop.permute.xlu0 %473  ;;  %v538_v48 = vpop.permute.xlu2 %537  ;;  %v686_v51 = vsel %vm682_vm6, %v677_v49, %v534_v43 }
  0xe4   : > { %v695_v52 = vsel %vm691_vm7, %v686_v51, %v566_v40 }
  0xe5   : > { %v704_v53 = vsel %vm700_vm8, %v695_v52, %v598_v37 }
  0xea   : > { %v442_v47 = vpop.permute.xlu1 %441 }
  0xeb   : > { %v506_v50 = vpop.permute.xlu0 %505  ;;  %v504_v56 = vpop.permute.xlu2 %503  ;;  %v661_v59 = vsel %vm655_vm2, %v652_v57, %v442_v47 }
  0xec   : > { %v670_v61 = vsel %vm664_vm4, %v661_v59, %v474_v44 }
  0xed   : > { %v679_v63 = vsel %vm673_vm5, %v670_v61, %v506_v50 }
  0xee   : > { %v688_v1 = vsel %vm682_vm6, %v679_v63, %v538_v48 }
  0xf2   : > { %v630_v54 = vpop.permute.xlu1 %629 }
  0xf3   : > { %v713_v14 = vsel %vm709_vm9, %v704_v53, %v630_v54  ;;  %v472_v55 = vpop.permute.xlu0 %471  ;;  %v634_v62 = vpop.permute.xlu2 %633 }
  0xf4   : > { %1435 = vmatmul.msk.f32.gmra.mxu0 %vm723_vm10, %v713_v14 }
  0xfa   : > { %v440_v58 = vpop.permute.xlu1 %439 }
  0xfb   : > { %v602_v60 = vpop.permute.xlu0 %601  ;;  %v444_v21 = vpop.permute.xlu2 %443  ;;  %v660_v9 = vsel %vm655_vm2, %v651_v8, %v440_v58 }
  0xfc   : > { %v669_v12 = vsel %vm664_vm4, %v660_v9, %v472_v55 }
  0xfd   : > { %v678_v15 = vsel %vm673_vm5, %v669_v12, %v504_v56 }
 0x102   : > { %v570_v2 = vpop.permute.xlu1 %569 }
 0x103   : > { %v697_v3 = vsel %vm691_vm7, %v688_v1, %v570_v2  ;;  %v412_v4 = vpop.permute.xlu0 %411  ;;  %v632_v19 = vpop.permute.xlu2 %631 }
 0x104   : > { %v706_v5 = vsel %vm700_vm8, %v697_v3, %v602_v60  ;;  %v653_v0 = vsel %vm287_vm0, %v1671_v24, %v412_v4 }
 0x105   : > { %v715_v7 = vsel %vm709_vm9, %v706_v5, %v634_v62  ;;  %v662_v29 = vsel %vm655_vm2, %v653_v0, %v444_v21 }
 0x106   : > { %1437 = vmatmul.msk.f32.vlgmr.msra.gmra.mxu3 %vm723_vm10, %v715_v7 }
 0x10a   : > { %v536_v6 = vpop.permute.xlu1 %535 }
 0x10b   : > { %v600_v11 = vpop.permute.xlu0 %599  ;;  %v687_v16 = vsel %vm682_vm6, %v678_v15, %v536_v6  ;;  %v572_v27 = vpop.permute.xlu2 %571 }
 0x112   : > { %v568_v18 = vpop.permute.xlu1 %567 }
 0x113   : > { %v696_v20 = vsel %vm691_vm7, %v687_v16, %v568_v18  ;;  %v508_v23 = vpop.permute.xlu0 %507  ;;  %v414_v10 = vpop.permute.xlu2 %413 }
 0x114   : > { %v705_v22 = vsel %vm700_vm8, %v696_v20, %v600_v11  ;;  %v654_v44 = vsel %vm287_vm0, %v1727_v38, %v414_v10  ;;  %vm1261_vm0 = vcmask 588800  }
 0x115   : > { %v714_v25 = vsel %vm709_vm9, %v705_v22, %v632_v19 }
 0x116   : > { %1436 = vmatmul.msk.f32.gmra.mxu0 %vm723_vm10, %v714_v25 }
 0x11a   : > { %v476_v26 = vpop.permute.xlu1 %475 }
 0x11b   : > { %v604_v28 = vpop.permute.xlu0 %603  ;;  %v671_v30 = vsel %vm664_vm4, %v662_v29, %v476_v26  ;;  %v510_v46 = vpop.permute.xlu2 %509 }
 0x11c   : > { %v680_v32 = vsel %vm673_vm5, %v671_v30, %v508_v23 }
 0x122   : > { %v540_v31 = vpop.permute.xlu1 %539 }
 0x123   : > { %v689_v33 = vsel %vm682_vm6, %v680_v32, %v540_v31  ;;  %v446_v35 = vpop.permute.xlu0 %445  ;;  %v606_v14 = vpop.permute.xlu2 %605 }
 0x124   : > { %v698_v24 = vsel %vm691_vm7, %v689_v33, %v572_v27  ;;  %v663_v47 = vsel %vm655_vm2, %v654_v44, %v446_v35 }
 0x125   : > { %v707_v39 = vsel %vm700_vm8, %v698_v24, %v604_v28 }
 0x129   : > { %v769_v37 = vpop.f32.mrf.mxu0 }
 0x12a   : > { %v797_v40 = vmul.f32 %v1847_v34, %v769_v37  ;;  %v636_v41 = vpop.permute.xlu1 %635 }
 0x12b   : > { %v716_v42 = vsel %vm709_vm9, %v707_v39, %v636_v41  ;;  %v542_v48 = vpop.permute.xlu0 %541 }
 0x12c   : > { %v809_v43 = vadd.f32 %v1853_v36, %v797_v40  ;;  %1438 = vmatmul.msk.f32.gmra.mxu3 %vm723_vm10, %v716_v42 }
 0x12e   : > { %v817_v45 = vmax.f32 %v809_v43, 0.0  ;;  %v1260_v43 = vld [vmem:[%s2176_s4 + $0x40] sm:$0xff] }
 0x12f   : > { %1293 = vmatpush.msra.mxu1 %v1260_v43  ;;  %1457 = vmatpush.msra.mxu2 %v1260_v43 }
 0x130   : > { %847 = vst.msk [vmem:[#allocation3 + $0x11] sm:$0xff] %vm655_vm2, %v817_v45 }
 0x132   : > { %v478_v49 = vpop.permute.xlu1 %477 }
 0x133   : > { %v672_v50 = vsel %vm664_vm4, %v663_v47, %v478_v49  ;;  %v638_v56 = vpop.permute.xlu0 %637  ;;  %v1258_v47 = vld [vmem:[%s2176_s4 + $0x30] sm:$0xff]  ;;  %v1257_v49 = vld [vmem:[%s2176_s4 + $0x28] sm:$0xff] }
 0x134   : > { %v681_v51 = vsel %vm673_vm5, %v672_v50, %v510_v46  ;;  %v1259_v46 = vld [vmem:[%s2176_s4 + $0x38] sm:$0xff]  ;;  %v1256_v50 = vld [vmem:[%s2176_s4 + $0x20] sm:$0xff] }
 0x135   : > { %v690_v38 = vsel %vm682_vm6, %v681_v51, %v542_v48  ;;  %1294 = vmatpush.msra.mxu1 %v1259_v46  ;;  %1458 = vmatpush.msra.mxu2 %v1259_v46  ;;  %v1255_v51 = vld [vmem:[%s2176_s4 + $0x18] sm:$0xff] }
 0x137   : > { %v895_v52 = vld [vmem:[#allocation3 + $0x12] sm:$0xff]  ;;  %1295 = vmatpush.msra.mxu1 %v1258_v47  ;;  %1459 = vmatpush.msra.mxu2 %v1258_v47 }
 0x138   : > { %v1866_v53 = vld [vmem:[#allocation3 + $0x10] sm:$0xff]  ;;  %1064 = vrot.lane.b32.xlu1 %v895_v52, %s1508_s10 }
 0x139   : > { %v887_v54 = vld [vmem:[#allocation3 + $0x11] sm:$0xff]  ;;  %1000 = vrot.lane.b32.xlu0 %v1866_v53, %s1506_s13  ;;  %1296 = vmatpush.msra.mxu1 %v1257_v49 }
 0x13a   : > { %1032 = vrot.lane.b32.xlu2 %v887_v54, %s1507_s14  ;;  %v574_v55 = vpop.permute.xlu1 %573  ;;  %1460 = vmatpush.msra.mxu2 %v1257_v49 }
 0x13b   : > { %v772_v57 = vpop.f32.mrf.mxu0  ;;  %v699_v58 = vsel %vm691_vm7, %v690_v38, %v574_v55  ;;  %1297 = vmatpush.msra.mxu1 %v1256_v50  ;;  %v1254_v55 = vld [vmem:[%s2176_s4 + $0x10] sm:$0xff] }
 0x13c   : > { %v798_v59 = vmul.f32 %v1847_v34, %v772_v57  ;;  %v708_v60 = vsel %vm700_vm8, %v699_v58, %v606_v14  ;;  %1461 = vmatpush.msra.mxu2 %v1256_v50  ;;  %v969_v14 = vpop.permute.xlu0 %968  ;;  %v1253_v57 = vld [vmem:[%s2176_s4 + $0x8] sm:$0xff]  ;;  %v1252_v58 = vld [vmem:[%s2176_s4] sm:$0xff] }
 0x13d   : > { %v717_v61 = vsel %vm709_vm9, %v708_v60, %v638_v56  ;;  %1298 = vmatpush.msra.mxu1 %v1255_v51 }
 0x13e   : > { %v810_v62 = vadd.f32 %v1853_v36, %v798_v59  ;;  %1439 = vmatmul.msk.f32.gmra.mxu3 %vm723_vm10, %v717_v61  ;;  %1462 = vmatpush.msra.mxu2 %v1255_v51 }
 0x13f   : > { %1299 = vmatpush.msra.mxu1 %v1254_v55 }
 0x140   : > { %v818_v63 = vmax.f32 %v810_v62, 0.0  ;;  %970 = vrot.lane.b32.xlu1 %v895_v52, %s1505_s12  ;;  %1463 = vmatpush.msra.mxu2 %v1254_v55 }
 0x141   : > { %1300 = vmatpush.msra.mxu1 %v1253_v57 }
 0x142   : > { %938 = vrot.lane.b32.xlu2 %v887_v54, %s1501_s8  ;;  %848 = vst.msk [vmem:[#allocation3 + $0x21] sm:$0xff] %vm655_vm2, %v818_v63  ;;  %1464 = vmatpush.msra.mxu2 %v1253_v57 }
 0x143   : > { %1301 = vmatpush.msra.mxu1 %v1252_v58 }
 0x144   : > { %1465 = vmatpush.msra.mxu2 %v1252_v58 }
 0x149   : > { %v920_v22 = vld [vmem:[#allocation3 + $0x22] sm:$0xff] }
 0x14a   : > { %v912_v23 = vld [vmem:[#allocation3 + $0x21] sm:$0xff] }
 0x14b   : > { %v1906_v25 = vld [vmem:[#allocation3 + $0x20] sm:$0xff] }
 0x14f   : > { %v937_v45 = vpop.permute.xlu1 %936 }
 0x152   : > { %v775_v1 = vpop.f32.mrf.mxu0 }
 0x153   : > { %v799_v2 = vmul.f32 %v1847_v34, %v775_v1 }
 0x155   : > { %v811_v3 = vadd.f32 %v1853_v36, %v799_v2 }
 0x157   : > { %v819_v4 = vmax.f32 %v811_v3, 0.0 }
 0x159   : > { %849 = vst.msk [vmem:[#allocation3 + $0x31] sm:$0xff] %vm655_vm2, %v819_v4 }
 0x160   : > { %v1927_v33 = vld [vmem:[#allocation3 + $0x30] sm:$0xff] }
 0x171   : > { %v778_v5 = vpop.f32.mrf.mxu0 }
 0x172   : > { %v800_v7 = vmul.f32 %v1847_v34, %v778_v5  ;;  %v855_v5 = vld [vmem:[#allocation3] sm:$0xff] }
 0x174   : > { %v812_v21 = vadd.f32 %v1853_v36, %v800_v7  ;;  %v911_v7 = vld [vmem:[#allocation3 + $0x90] sm:$0xff] }
 0x176   : > { %v820_v8 = vmax.f32 %v812_v21, 0.0  ;;  %v1184_v21 = vsel %vm655_vm2, %v855_v5, %v937_v45 }
 0x178   : > { %850 = vst.msk [vmem:[#allocation3 + $0x41] sm:$0xff] %vm655_vm2, %v820_v8  ;;  %v1192_v8 = vsel %vm673_vm5, %v1184_v21, %v969_v14 }
 0x17f   : > { %v1947_v37 = vld [vmem:[#allocation3 + $0x41] sm:$0xff] }
 0x180   : > { %v1958_v41 = vld [vmem:[#allocation3 + $0x42] sm:$0xff] }
 0x181   : > { %v1990_v52 = vld [vmem:[#allocation3 + $0x40] sm:$0xff] }
 0x189   : > { %v784_v6 = vpop.f32.mrf.mxu3 }
 0x18a   : > { %v802_v9 = vmul.f32 %v1847_v34, %v784_v6 }
 0x18c   : > { %v814_v11 = vadd.f32 %v1853_v36, %v802_v9 }
 0x18e   : > { %v822_v12 = vmax.f32 %v814_v11, 0.0 }
 0x190   : > { %852 = vst.msk [vmem:[#allocation3 + $0x61] sm:$0xff] %vm655_vm2, %v822_v12 }
 0x193   : > { %v781_v17 = vpop.f32.mrf.mxu0 }
 0x194   : > { %v801_v13 = vmul.f32 %v1847_v34, %v781_v17  ;;  %v1951_v39 = vpop.permute.xlu2 %1032  ;;  %v919_v17 = vld [vmem:[#allocation3 + $0x91] sm:$0xff] }
 0x196   : > { %v813_v15 = vadd.f32 %v1853_v36, %v801_v13 }
 0x197   : > { %v924_v16 = vld [vmem:[#allocation3 + $0x62] sm:$0xff] }
 0x198   : > { %v916_v18 = vld [vmem:[#allocation3 + $0x61] sm:$0xff]  ;;  %v821_v20 = vmax.f32 %v813_v15, 0.0  ;;  %1168 = vrot.lane.b32.xlu1 %v924_v16, %s1509_s11 }
 0x199   : > { %v1893_v19 = vld [vmem:[#allocation3 + $0x60] sm:$0xff]  ;;  %1136 = vrot.lane.b32.xlu2 %v916_v18, %s1510_s15 }
 0x19a   : > { %1104 = vrot.lane.b32.xlu0 %v1893_v19, %s1511_s16  ;;  %851 = vst.msk [vmem:[#allocation3 + $0x51] sm:$0xff] %vm655_vm2, %v821_v20  ;;  %v927_v20 = vld [vmem:[#allocation3 + $0x92] sm:$0xff] }
 0x19c   : > { %v1963_v42 = vpop.permute.xlu2 %938 }
 0x19d   : > { %v1185_v49 = vsel %vm655_vm2, %v1866_v53, %v1963_v42 }
 0x1a0   : > { %1074 = vrot.lane.b32.xlu1 %v924_v16, %s1508_s10 }
 0x1a1   : > { %1042 = vrot.lane.b32.xlu2 %v916_v18, %s1507_s14  ;;  %v899_v59 = vld [vmem:[#allocation3 + $0x52] sm:$0xff] }
 0x1a2   : > { %1010 = vrot.lane.b32.xlu0 %v1893_v19, %s1506_s13  ;;  %v2009_v60 = vld [vmem:[#allocation3 + $0x50] sm:$0xff] }
 0x1a3   : > { %v891_v1 = vld [vmem:[#allocation3 + $0x51] sm:$0xff] }
 0x1a8   : > { %1160 = vrot.lane.b32.xlu1 %v920_v22, %s1509_s11 }
 0x1a9   : > { %1128 = vrot.lane.b32.xlu2 %v912_v23, %s1510_s15 }
 0x1aa   : > { %1096 = vrot.lane.b32.xlu0 %v1906_v25, %s1511_s16  ;;  %v1065_v54 = vpop.permute.xlu1 %1064 }
 0x1ab   : > { %v1001_v63 = vpop.permute.xlu0 %1000 }
 0x1ac   : > { %v1200_v12 = vsel %vm691_vm7, %v1192_v8, %v1001_v63 }
 0x1ad   : > { %v1208_v13 = vsel %vm709_vm9, %v1200_v12, %v1951_v39 }
 0x1af   : > { %v787_v26 = vpop.f32.mrf.mxu3 }
 0x1b0   : > { %v803_v0 = vmul.f32 %v1847_v34, %v787_v26  ;;  %1002 = vrot.lane.b32.xlu1 %v1906_v25, %s1506_s13 }
 0x1b1   : > { %980 = vrot.lane.b32.xlu2 %v924_v16, %s1505_s12  ;;  %v1217_v16 = vsel %vm1216_vm12, %v1208_v13, %v1065_v54 }
 0x1b2   : > { %948 = vrot.lane.b32.xlu0 %v916_v18, %s1501_s8  ;;  %v815_v27 = vadd.f32 %v1853_v36, %v803_v0  ;;  %v2013_v61 = vpop.permute.xlu1 %970 }
 0x1b4   : > { %v823_v28 = vmax.f32 %v815_v27, 0.0 }
 0x1b6   : > { %853 = vst.msk [vmem:[#allocation3 + $0x71] sm:$0xff] %vm655_vm2, %v823_v28 }
 0x1b9   : > { %1066 = vrot.lane.b32.xlu2 %v920_v22, %s1508_s10 }
 0x1ba   : > { %1034 = vrot.lane.b32.xlu0 %v912_v23, %s1507_s14 }
 0x1bd   : > { %v1919_v29 = vld [vmem:[#allocation3 + $0x70] sm:$0xff] }
 0x1be   : > { %1012 = vrot.lane.b32.xlu1 %v1919_v29, %s1506_s13  ;;  %v925_v35 = vld [vmem:[#allocation3 + $0x72] sm:$0xff] }
 0x1bf   : > { %v870_v24 = vld [vmem:[#allocation3 + $0x71] sm:$0xff] }
 0x1c1   : > { %972 = vrot.lane.b32.xlu2 %v920_v22, %s1505_s12  ;;  %v790_v30 = vpop.f32.mrf.mxu3 }
 0x1c2   : > { %940 = vrot.lane.b32.xlu0 %v912_v23, %s1501_s8  ;;  %v804_v31 = vmul.f32 %v1847_v34, %v790_v30  ;;  %v1938_v34 = vld [vmem:[#allocation3 + $0x31] sm:$0xff] }
 0x1c4   : > { %v816_v32 = vadd.f32 %v1853_v36, %v804_v31  ;;  %v1942_v36 = vld [vmem:[#allocation3 + $0x32] sm:$0xff] }
 0x1c6   : > { %1098 = vrot.lane.b32.xlu1 %v1927_v33, %s1511_s16  ;;  %v824_v10 = vmax.f32 %v816_v32, 0.0 }
 0x1c8   : > { %854 = vst.msk [vmem:[#allocation3 + $0x81] sm:$0xff] %vm655_vm2, %v824_v10 }
 0x1c9   : > { %1170 = vrot.lane.b32.xlu2 %v925_v35, %s1509_s11 }
 0x1ca   : > { %1106 = vrot.lane.b32.xlu0 %v1919_v29, %s1511_s16 }
 0x1ce   : > { %950 = vrot.lane.b32.xlu1 %v870_v24, %s1501_s8 }
 0x1cf   : > { %v910_v40 = vld [vmem:[#allocation3 + $0x80] sm:$0xff] }
 0x1d0   : > { %v918_v44 = vld [vmem:[#allocation3 + $0x81] sm:$0xff] }
 0x1d1   : > { %1076 = vrot.lane.b32.xlu2 %v925_v35, %s1508_s10  ;;  %v926_v38 = vld [vmem:[#allocation3 + $0x82] sm:$0xff] }
 0x1d2   : > { %1138 = vrot.lane.b32.xlu0 %v870_v24, %s1510_s15 }
 0x1d6   : > { %1036 = vrot.lane.b32.xlu1 %v1938_v34, %s1507_s14 }
 0x1d9   : > { %1162 = vrot.lane.b32.xlu2 %v1942_v36, %s1509_s11 }
 0x1da   : > { %1044 = vrot.lane.b32.xlu0 %v870_v24, %s1507_s14 }
 0x1de   : > { %944 = vrot.lane.b32.xlu1 %v1947_v37, %s1501_s8 }
 0x1e1   : > { %1004 = vrot.lane.b32.xlu2 %v1927_v33, %s1506_s13 }
 0x1e2   : > { %1130 = vrot.lane.b32.xlu0 %v1938_v34, %s1510_s15 }
 0x1e6   : > { %1108 = vrot.lane.b32.xlu1 %v910_v40, %s1511_s16 }
 0x1e9   : > { %976 = vrot.lane.b32.xlu2 %v1958_v41, %s1505_s12 }
 0x1ea   : > { %982 = vrot.lane.b32.xlu0 %v925_v35, %s1505_s12 }
 0x1ee   : > { %1140 = vrot.lane.b32.xlu1 %v918_v44, %s1510_s15 }
 0x1f1   : > { %1014 = vrot.lane.b32.xlu2 %v910_v40, %s1506_s13 }
 0x1f2   : > { %1068 = vrot.lane.b32.xlu0 %v1942_v36, %s1508_s10 }
 0x1f3   : > { %v1978_v48 = vpop.permute.xlu2 %1136 }
 0x1f6   : > { %1046 = vrot.lane.b32.xlu1 %v918_v44, %s1507_s14 }
 0x1f9   : > { %1100 = vrot.lane.b32.xlu2 %v1990_v52, %s1511_s16 }
 0x1fa   : > { %1172 = vrot.lane.b32.xlu0 %v926_v38, %s1509_s11 }
 0x1fb   : > { %v1998_v56 = vpop.permute.xlu2 %1042 }
 0x1fe   : > { %1132 = vrot.lane.b32.xlu1 %v1947_v37, %s1510_s15 }
 0x201   : > { %1072 = vrot.lane.b32.xlu2 %v899_v59, %s1508_s10 }
 0x202   : > { %1008 = vrot.lane.b32.xlu0 %v2009_v60, %s1506_s13 }
 0x203   : > { %v1129_v62 = vpop.permute.xlu2 %1128 }
 0x206   : > { %1040 = vrot.lane.b32.xlu1 %v891_v1, %s1507_s14 }
 0x209   : > { %946 = vrot.lane.b32.xlu2 %v891_v1, %s1501_s8 }
 0x20a   : > { %1078 = vrot.lane.b32.xlu0 %v926_v38, %s1508_s10  ;;  %v2018_v2 = vpop.permute.xlu1 %1168 }
 0x20b   : > { %v981_v3 = vpop.permute.xlu2 %980 }
 0x20c   : > { %v2020_v4 = vpop.permute.xlu0 %1104 }
 0x20e   : > { %978 = vrot.lane.b32.xlu1 %v899_v59, %s1505_s12 }
 0x211   : > { %1110 = vrot.lane.b32.xlu2 %v911_v7, %s1511_s16 }
 0x212   : > { %1164 = vrot.lane.b32.xlu0 %v1958_v41, %s1509_s11  ;;  %v2028_v9 = vpop.permute.xlu1 %1074 }
 0x213   : > { %v1067_v6 = vpop.permute.xlu2 %1066 }
 0x214   : > { %v2030_v11 = vpop.permute.xlu0 %1010 }
 0x216   : > { %942 = vrot.lane.b32.xlu1 %v1938_v34, %s1501_s8 }
 0x219   : > { %1142 = vrot.lane.b32.xlu2 %v919_v17, %s1510_s15 }
 0x21a   : > { %974 = vrot.lane.b32.xlu0 %v1942_v36, %s1505_s12  ;;  %v1161_v23 = vpop.permute.xlu1 %1160 }
 0x21b   : > { %v973_v15 = vpop.permute.xlu2 %972 }
 0x21c   : > { %v1097_v18 = vpop.permute.xlu0 %1096 }
 0x21d   : > { %v1226_v22 = vsel %vm1225_vm13, %v1217_v16, %v1097_v18 }
 0x21e   : > { %v1235_v26 = vsel %vm1234_vm14, %v1226_v22, %v1129_v62  ;;  %1174 = vrot.lane.b32.xlu1 %v927_v20, %s1509_s11 }
 0x21f   : > { %v1244_v0 = vsel %vm1243_vm15, %v1235_v26, %v1161_v23 }
 0x220   : > { %1440 = vmatmul.msk.f32.vlgmr.msra.gmra.mxu1 %vm1261_vm0, %v1244_v0 }
 0x221   : > { %1006 = vrot.lane.b32.xlu2 %v1990_v52, %s1506_s13 }
 0x222   : > { %1038 = vrot.lane.b32.xlu0 %v1947_v37, %s1507_s14  ;;  %v1003_v32 = vpop.permute.xlu1 %1002 }
 0x223   : > { %v2052_v30 = vpop.permute.xlu2 %1170 }
 0x224   : > { %v949_v27 = vpop.permute.xlu0 %948 }
 0x225   : > { %v1190_v28 = vsel %vm655_vm2, %v1893_v19, %v949_v27 }
 0x226   : > { %v1198_v31 = vsel %vm673_vm5, %v1190_v28, %v981_v3  ;;  %1070 = vrot.lane.b32.xlu1 %v1958_v41, %s1508_s10 }
 0x229   : > { %1102 = vrot.lane.b32.xlu2 %v2009_v60, %s1511_s16 }
 0x22a   : > { %1134 = vrot.lane.b32.xlu0 %v891_v1, %s1510_s15  ;;  %s2149_s15 = scalar_lea.vmem %s2179_s7, %s1450_s27 }
 0x22b   : > { %v1077_v35 = vpop.permute.xlu2 %1076 }
 0x22c   : > { %v1035_v10 = vpop.permute.xlu0 %1034 }
 0x22e   : > { %1166 = vrot.lane.b32.xlu1 %v899_v59, %s1509_s11 }
 0x230   : > { %v1013_v24 = vpop.permute.xlu1 %1012 }
 0x231   : > { %v1206_v19 = vsel %vm691_vm7, %v1198_v31, %v1013_v24 }
 0x233   : > { %v1163_v39 = vpop.permute.xlu2 %1162 }
 0x234   : > { %v941_v34 = vpop.permute.xlu0 %940 }
 0x235   : > { %v1186_v36 = vsel %vm655_vm2, %v1906_v25, %v941_v34  ;;  %v1193_v25 = vsel %vm673_vm5, %v1185_v49, %v2013_v61 }
 0x236   : > { %v1194_v37 = vsel %vm673_vm5, %v1186_v36, %v973_v15  ;;  %v1201_v38 = vsel %vm691_vm7, %v1193_v25, %v1003_v32 }
 0x237   : > { %v1209_v14 = vsel %vm709_vm9, %v1201_v38, %v1035_v10 }
 0x238   : > { %v1099_v40 = vpop.permute.xlu1 %1098  ;;  %v1218_v57 = vsel %vm1216_vm12, %v1209_v14, %v1067_v6 }
 0x239   : > { %v1227_v58 = vsel %vm1225_vm13, %v1218_v57, %v1099_v40 }
 0x23b   : > { %v1005_v44 = vpop.permute.xlu2 %1004 }
 0x23c   : > { %v1107_v41 = vpop.permute.xlu0 %1106  ;;  %v1202_v27 = vsel %vm691_vm7, %v1194_v37, %v1005_v44 }
 0x240   : > { %v2065_v43 = vpop.permute.xlu1 %950 }
 0x243   : > { %v977_v50 = vpop.permute.xlu2 %976 }
 0x244   : > { %v1139_v45 = vpop.permute.xlu0 %1138 }
 0x248   : > { %v1037_v46 = vpop.permute.xlu1 %1036 }
 0x249   : > { %v1210_v28 = vsel %vm709_vm9, %v1202_v27, %v1037_v46 }
 0x24b   : > { %v1015_v62 = vpop.permute.xlu2 %1014 }
 0x24c   : > { %v1045_v47 = vpop.permute.xlu0 %1044 }
 0x24d   : > { %v1214_v51 = vsel %vm709_vm9, %v1206_v19, %v1045_v47 }
 0x24e   : > { %v1223_v54 = vsel %vm1216_vm12, %v1214_v51, %v1077_v35 }
 0x250   : > { %v945_v55 = vpop.permute.xlu1 %944 }
 0x251   : > { %v1188_v17 = vsel %vm655_vm2, %v1990_v52, %v945_v55 }
 0x252   : > { %v1196_v15 = vsel %vm673_vm5, %v1188_v17, %v977_v50 }
 0x253   : > { %v1101_v1 = vpop.permute.xlu2 %1100 }
 0x254   : > { %v1131_v59 = vpop.permute.xlu0 %1130 }
 0x255   : > { %v1236_v53 = vsel %vm1234_vm14, %v1227_v58, %v1131_v59 }
 0x256   : > { %v1245_v42 = vsel %vm1243_vm15, %v1236_v53, %v1163_v39  ;;  %v1489_v53 = vld [vmem:[%s2177_s5] ss:$0 sm:$0xff] }
 0x257   : > { %1441 = vmatmul.msk.f32.gmra.mxu1 %vm1261_vm0, %v1245_v42  ;;  %v1490_v42 = vld [vmem:[%s2178_s6] ss:$0 sm:$0xff] }
 0x258   : > { %v1109_v61 = vpop.permute.xlu1 %1108 }
 0x259   : > { %v1232_v47 = vsel %vm1225_vm13, %v1223_v54, %v1109_v61 }
 0x25b   : > { %v1073_v21 = vpop.permute.xlu2 %1072 }
 0x25c   : > { %v983_v63 = vpop.permute.xlu0 %982 }
 0x260   : > { %v1141_v3 = vpop.permute.xlu1 %1140 }
 0x263   : > { %v947_v13 = vpop.permute.xlu2 %946 }
 0x264   : > { %v1069_v5 = vpop.permute.xlu0 %1068  ;;  %v1189_v10 = vsel %vm655_vm2, %v2009_v60, %v947_v13 }
 0x265   : > { %v1219_v32 = vsel %vm1216_vm12, %v1210_v28, %v1069_v5 }
 0x268   : > { %v1047_v7 = vpop.permute.xlu1 %1046 }
 0x26b   : > { %v1111_v31 = vpop.permute.xlu2 %1110 }
 0x26c   : > { %v1173_v8 = vpop.permute.xlu0 %1172 }
 0x270   : > { %v1133_v12 = vpop.permute.xlu1 %1132 }
 0x273   : > { %v1143_v40 = vpop.permute.xlu2 %1142 }
 0x274   : > { %v1009_v6 = vpop.permute.xlu0 %1008 }
 0x275   : > { %v1204_v16 = vsel %vm691_vm7, %v1196_v15, %v1009_v6 }
 0x278   : > { %v1041_v18 = vpop.permute.xlu1 %1040 }
 0x279   : > { %v1212_v20 = vsel %vm709_vm9, %v1204_v16, %v1041_v18 }
 0x27a   : > { %v1221_v22 = vsel %vm1216_vm12, %v1212_v20, %v1073_v21 }
 0x27b   : > { %v1230_v26 = vsel %vm1225_vm13, %v1221_v22, %v2020_v4  ;;  %v1007_v25 = vpop.permute.xlu2 %1006 }
 0x27c   : > { %v1079_v23 = vpop.permute.xlu0 %1078  ;;  %v1239_v0 = vsel %vm1234_vm14, %v1230_v26, %v1978_v48  ;;  %v1228_v48 = vsel %vm1225_vm13, %v1219_v32, %v1101_v1 }
 0x27d   : > { %v1248_v52 = vsel %vm1243_vm15, %v1239_v0, %v2018_v2  ;;  %v1237_v2 = vsel %vm1234_vm14, %v1228_v48, %v1133_v12 }
 0x27e   : > { %1444 = vmatmul.msk.f32.vlgmr.msra.gmra.mxu2 %vm1261_vm0, %v1248_v52 }
 0x280   : > { %v979_v35 = vpop.permute.xlu1 %978 }
 0x281   : > { %v1197_v4 = vsel %vm673_vm5, %v1189_v10, %v979_v35 }
 0x282   : > { %v1205_v24 = vsel %vm691_vm7, %v1197_v4, %v2030_v11 }
 0x283   : > { %v1213_v19 = vsel %vm709_vm9, %v1205_v24, %v1998_v56  ;;  %v1191_v56 = vsel %vm655_vm2, %v1919_v29, %v2065_v43 }
 0x284   : > { %v1165_v34 = vpop.permute.xlu0 %1164  ;;  %v1222_v37 = vsel %vm1216_vm12, %v1213_v19, %v2028_v9  ;;  %v1199_v46 = vsel %vm673_vm5, %v1191_v56, %v983_v63 }
 0x285   : > { %v1246_v36 = vsel %vm1243_vm15, %v1237_v2, %v1165_v34  ;;  %v1231_v60 = vsel %vm1225_vm13, %v1222_v37, %v1107_v41  ;;  %v1241_v41 = vsel %vm1234_vm14, %v1232_v47, %v1141_v3 }
 0x286   : > { %1442 = vmatmul.msk.f32.gmra.mxu1 %vm1261_vm0, %v1246_v36  ;;  %v1240_v39 = vsel %vm1234_vm14, %v1231_v60, %v1139_v45  ;;  %v1207_v45 = vsel %vm691_vm7, %v1199_v46, %v1015_v62  ;;  %v1103_v62 = vpop.permute.xlu2 %1102 }
 0x287   : > { %v1249_v11 = vsel %vm1243_vm15, %v1240_v39, %v2052_v30  ;;  %v1215_v49 = vsel %vm709_vm9, %v1207_v45, %v1047_v7  ;;  %v1250_v30 = vsel %vm1243_vm15, %v1241_v41, %v1173_v8 }
 0x288   : > { %v943_v44 = vpop.permute.xlu1 %942  ;;  %1445 = vmatmul.msk.f32.gmra.mxu2 %vm1261_vm0, %v1249_v11  ;;  %v1224_v50 = vsel %vm1216_vm12, %v1215_v49, %v1079_v23 }
 0x289   : > { %v1233_v29 = vsel %vm1225_vm13, %v1224_v50, %v1111_v31  ;;  %v1187_v54 = vsel %vm655_vm2, %v1927_v33, %v943_v44 }
 0x28a   : > { %v1242_v14 = vsel %vm1234_vm14, %v1233_v29, %v1143_v40 }
 0x28c   : > { %v975_v9 = vpop.permute.xlu0 %974 }
 0x28d   : > { %v1195_v38 = vsel %vm673_vm5, %v1187_v54, %v975_v9 }
 0x28e   : > { %v1203_v57 = vsel %vm691_vm7, %v1195_v38, %v1007_v25 }
 0x290   : > { %v1175_v51 = vpop.permute.xlu1 %1174  ;;  %1446 = vmatmul.msk.f32.gmra.mxu2 %vm1261_vm0, %v1250_v30 }
 0x291   : > { %v1251_v55 = vsel %vm1243_vm15, %v1242_v14, %v1175_v51 }
 0x294   : > { %v1039_v43 = vpop.permute.xlu0 %1038 }
 0x295   : > { %v1211_v59 = vsel %vm709_vm9, %v1203_v57, %v1039_v43 }
 0x298   : > { %v1071_v58 = vpop.permute.xlu1 %1070  ;;  %1447 = vmatmul.msk.f32.gmra.mxu2 %vm1261_vm0, %v1251_v55 }
 0x299   : > { %v1220_v33 = vsel %vm1216_vm12, %v1211_v59, %v1071_v58 }
 0x29a   : > { %v1229_v1 = vsel %vm1225_vm13, %v1220_v33, %v1103_v62 }
 0x29c   : > { %v1135_v63 = vpop.permute.xlu0 %1134 }
 0x29d   : > { %v1303_v61 = vpop.f32.mrf.mxu1  ;;  %v1238_v7 = vsel %vm1234_vm14, %v1229_v1, %v1135_v63 }
 0x29e   : > { %v1331_v3 = vmul.f32 %v1489_v53, %v1303_v61 }
 0x2a0   : > { %v1343_v5 = vadd.f32 %v1490_v42, %v1331_v3  ;;  %v1167_v21 = vpop.permute.xlu1 %1166 }
 0x2a1   : > { %v1247_v12 = vsel %vm1243_vm15, %v1238_v7, %v1167_v21 }
 0x2a2   : > { %v1351_v8 = vmax.f32 %v1343_v5, 0.0  ;;  %1443 = vmatmul.msk.f32.gmra.mxu1 %vm1261_vm0, %v1247_v12 }
 0x2a4   : > { %1359 = vst.msk [vmem:[%s2149_s15] sm:$0xff] %vm655_vm2, %v1351_v8 }
 0x2d4   : > { %v1306_v6 = vpop.f32.mrf.mxu1 }
 0x2d5   : > { %v1332_v17 = vmul.f32 %v1489_v53, %v1306_v6 }
 0x2d7   : > { %v1344_v13 = vadd.f32 %v1490_v42, %v1332_v17 }
 0x2d9   : > { %v1352_v15 = vmax.f32 %v1344_v13, 0.0 }
 0x2db   : > { %1360 = vst.msk [vmem:[%s2149_s15 + $0x8] sm:$0xff] %vm655_vm2, %v1352_v15 }
 0x301   : > { %v1315_v16 = vpop.f32.mrf.mxu2 }
 0x302   : > { %v1335_v18 = vmul.f32 %v1489_v53, %v1315_v16 }
 0x303   : > { %v1309_v20 = vpop.f32.mrf.mxu1 }
 0x304   : > { %v1333_v22 = vmul.f32 %v1489_v53, %v1309_v20  ;;  %v1347_v23 = vadd.f32 %v1490_v42, %v1335_v18 }
 0x306   : > { %v1345_v26 = vadd.f32 %v1490_v42, %v1333_v22  ;;  %v1355_v0 = vmax.f32 %v1347_v23, 0.0 }
 0x308   : > { %v1353_v27 = vmax.f32 %v1345_v26, 0.0  ;;  %1363 = vst.msk [vmem:[%s2149_s15 + $0x20] sm:$0xff] %vm655_vm2, %v1355_v0 }
 0x30a   : > { %1361 = vst.msk [vmem:[%s2149_s15 + $0x10] sm:$0xff] %vm655_vm2, %v1353_v27 }
 0x30b   : > { %v1318_v52 = vpop.f32.mrf.mxu2 }
 0x30c   : > { %v1336_v28 = vmul.f32 %v1489_v53, %v1318_v52 }
 0x30e   : > { %v1348_v31 = vadd.f32 %v1490_v42, %v1336_v28 }
 0x310   : > { %v1356_v32 = vmax.f32 %v1348_v31, 0.0 }
 0x312   : > { %1364 = vst.msk [vmem:[%s2149_s15 + $0x28] sm:$0xff] %vm655_vm2, %v1356_v32 }
 0x313   : > { %v1321_v10 = vpop.f32.mrf.mxu2 }
 0x314   : > { %v1337_v35 = vmul.f32 %v1489_v53, %v1321_v10 }
 0x316   : > { %v1349_v4 = vadd.f32 %v1490_v42, %v1337_v35 }
 0x318   : > { %v1357_v48 = vmax.f32 %v1349_v4, 0.0 }
 0x31a   : > { %1365 = vst.msk [vmem:[%s2149_s15 + $0x30] sm:$0xff] %vm655_vm2, %v1357_v48 }
 0x31b   : > { %v1324_v24 = vpop.f32.mrf.mxu2 }
 0x31c   : > { %v1338_v2 = vmul.f32 %v1489_v53, %v1324_v24 }
 0x31e   : > { %v1350_v19 = vadd.f32 %v1490_v42, %v1338_v2 }
 0x31f   : > { %v1312_v34 = vpop.f32.mrf.mxu1 }
 0x320   : > { %v1358_v36 = vmax.f32 %v1350_v19, 0.0  ;;  %v1334_v37 = vmul.f32 %v1489_v53, %v1312_v34 }
 0x322   : > { %1366 = vst.msk [vmem:[%s2149_s15 + $0x38] sm:$0xff] %vm655_vm2, %v1358_v36  ;;  %v1346_v60 = vadd.f32 %v1490_v42, %v1334_v37 }
 0x324   : > { %v1354_v39 = vmax.f32 %v1346_v60, 0.0 }
 0x326   : > { %1362 = vst.msk [vmem:[%s2149_s15 + $0x18] sm:$0xff] %vm655_vm2, %v1354_v39 }
 0x327 PF: > { %s17_s24 = sadd.s32 1, %s1497_s24  }
 0x328   : > { %p14_p4 = scmp.ge.s32.totalorder %s17_s24, 4  }
 0x32a   :  { %16 = sbr.rel (!%p14_p4) target bundleno = 1 (0x1), region = 82 }

</bundles_post_ra>
